<compile_context>
chip_gen: v6e
topology: v6e:2x2x1
jax: 0.10.0
libtpu: 0.0.40
codegen_flags: <defaults>
</compile_context>

<pallas_src>
import functools

import jax
import jax.numpy as jnp
import numpy as np
from jax.experimental import pallas as pl
from jax.experimental.pallas import tpu as pltpu


def _round_up(x: int, m: int) -> int:
    return ((x + m - 1) // m) * m


def classifier_kernel(x_ref, w_ref, b_ref, out_ref, acc_ref):
    """Grid = (batch blocks, feature-reduction blocks).

    x_ref  : (Bt, Kt)      flattened image block (batch rows x C*HW slice)
    w_ref  : (Kt, Npad)    folded head weights (normalization + 1/HW baked in)
    b_ref  : (1, Npad)     folded head bias
    out_ref: (Bt, Npad)    class logits block (resident across the k axis)
    acc_ref: (Bt, Npad)    f32 VMEM accumulator scratch
    """
    k = pl.program_id(1)

    @pl.when(k == 0)
    def _():
        acc_ref[...] = jnp.zeros_like(acc_ref)

    x = x_ref[...].astype(jnp.float32)
    acc_ref[...] += jnp.dot(x, w_ref[...], preferred_element_type=jnp.float32)

    @pl.when(k == pl.num_programs(1) - 1)
    def _():
        out_ref[...] = (acc_ref[...] + b_ref[...]).astype(out_ref.dtype)


@functools.partial(jax.jit, static_argnames=("bt", "kt"))
def classifier_forward(images, mean, std, w, b, *, bt=128, kt=2048):
    """Pallas wrapper.

    images: [B, C, H, W] (NCHW).  mean/std: [C].  w: [C, num_classes].  b: [num_classes].
    Returns dict mirroring Classifier._init_return_dict() with 'class_logits': [B, num_classes].
    """
    B, C, H, W = images.shape
    HW = H * W
    K = C * HW
    N = w.shape[1]

    # ---- Fold normalization + mean-pool into the linear head (wrapper-side). ----
    inv_std = (1.0 / std).astype(jnp.float32)
    w32 = w.astype(jnp.float32)
    w_fold = w32 * inv_std[:, None] / jnp.float32(HW)          # (C, N)
    w_flat = jnp.repeat(w_fold, HW, axis=0)                     # (K, N): W''[c*HW+p, n]
    b_fold = b.astype(jnp.float32) - (mean.astype(jnp.float32) * inv_std) @ w32  # (N,)

    # ---- Pad to TPU-friendly tile shapes. ----
    n_pad = _round_up(max(N, 128), 128)          # lane-dense output slab
    bt_eff = min(bt, _round_up(B, 8))            # batch tile, multiple of 8
    b_padded = _round_up(B, bt_eff)
    kt_eff = min(kt, _round_up(K, 128))          # feature tile, multiple of 128
    k_padded = _round_up(K, kt_eff)

    x = images.reshape(B, K)
    x = jnp.pad(x, ((0, b_padded - B), (0, k_padded - K)))
    w_p = jnp.pad(w_flat, ((0, k_padded - K), (0, n_pad - N)))   # zero rows/cols -> no effect
    b_p = jnp.pad(b_fold.reshape(1, N), ((0, 0), (0, n_pad - N)))

    grid = (b_padded // bt_eff, k_padded // kt_eff)

    logits_padded = pl.pallas_call(
        classifier_kernel,
        out_shape=jax.ShapeDtypeStruct((b_padded, n_pad), jnp.float32),
        grid=grid,
        in_specs=[
            pl.BlockSpec((bt_eff, kt_eff), lambda i, k: (i, k)),
            pl.BlockSpec((kt_eff, n_pad), lambda i, k: (k, 0)),
            pl.BlockSpec((1, n_pad), lambda i, k: (0, 0)),
        ],
        out_specs=pl.BlockSpec((bt_eff, n_pad), lambda i, k: (i, 0)),
        scratch_shapes=[pltpu.VMEM((bt_eff, n_pad), jnp.float32)],
        compiler_params=pltpu.CompilerParams(
            dimension_semantics=("parallel", "arbitrary"),
            vmem_limit_bytes=64 << 20,
        ),
    )(x, w_p, b_p)

    logits = logits_padded[:B, :N]

    # Mirrors Classifier._init_return_dict() + assignment of class_logits.
    return {
        "class_logits": logits,
        "sem_seg_logits": None,
        "sem_seg_masks": None,
        "losses": None,
    }


def _reference_forward(images, mean, std, w, b):
    """Pure-JAX reference for correctness check (explicit normalize + GAP + head)."""
    normed = (images - mean[None, :, None, None]) / std[None, :, None, None]
    feats = normed.mean(axis=(2, 3))          # global average pool
    return feats @ w + b[None, :]


if __name__ == "__main__":
    # Small shapes consistent with the forward pass (NCHW images).
    B, C, H, W = 2, 4, 16, 16
    NUM_CLASSES = 10

    key = jax.random.PRNGKey(0)
    k_img, k_w, k_b = jax.random.split(key, 3)

    images = jax.random.uniform(k_img, (B, C, H, W), dtype=jnp.float32)

    # Deterministic normalization buffers (analogous to registered mean/std buffers).
    mean = jnp.linspace(0.4, 0.5, C, dtype=jnp.float32)
    std = jnp.linspace(0.2, 0.3, C, dtype=jnp.float32)

    # Deterministic synthetic base-model parameters (GAP + linear head).
    # TODO(synk): real `base_model` is injected/abstract in the PyTorch module.
    w = jax.random.normal(k_w, (C, NUM_CLASSES), dtype=jnp.float32) * 0.1
    b = jax.random.normal(k_b, (NUM_CLASSES,), dtype=jnp.float32) * 0.01

    out = classifier_forward(images, mean, std, w, b)
    logits = jax.block_until_ready(out["class_logits"])

    ref = _reference_forward(images, mean, std, w, b)
    np.testing.assert_allclose(np.asarray(logits), np.asarray(ref),
                               rtol=1e-4, atol=1e-4)

    print("KERNEL_OK")
</pallas_src>

<mosaic_0001>
module attributes {stable_mosaic.version = 11 : i64} {
  func.func @classifier_kernel(%arg0: i32, %arg1: i32, %arg2: memref<8x1024xf32, #tpu.memory_space<vmem>>, %arg3: memref<1024x128xf32, #tpu.memory_space<vmem>>, %arg4: memref<1x128xf32, #tpu.memory_space<vmem>>, %arg5: memref<8x128xf32, #tpu.memory_space<vmem>>, %arg6: memref<8x128xf32, #tpu.memory_space<vmem>>) attributes {dimension_semantics = [#tpu.dimension_semantics<parallel>, #tpu.dimension_semantics<arbitrary>], iteration_bounds = array<i64: 1, 1>, scalar_prefetch = 0 : i64, scratch_operands = 1 : i64, tpu.core_type = #tpu.core_type<tc>, window_params = [{transform_indices = @transform_0, window_bounds = array<i64: 8, 1024>}, {transform_indices = @transform_1, window_bounds = array<i64: 1024, 128>}, {pipeline_mode = #tpu.pipeline_mode<synchronous>, transform_indices = @transform_2, window_bounds = array<i64: 1, 128>}, {transform_indices = @transform_3, window_bounds = array<i64: 8, 128>}]} {
    %c0_i32 = arith.constant 0 : i32
    %0 = arith.cmpi eq, %arg1, %c0_i32 : i32
    %1 = arith.extui %0 : i1 to i32
    %c0_i32_0 = arith.constant 0 : i32
    %2 = arith.cmpi ne, %1, %c0_i32_0 : i32
    scf.if %2 {
      %cst_10 = arith.constant 0.000000e+00 : f32
      %12 = vector.broadcast %cst_10 : f32 to vector<8x128xf32>
      %c0_11 = arith.constant 0 : index
      %c0_12 = arith.constant 0 : index
      %13 = vector.load %arg6[%c0_11, %c0_12] : memref<8x128xf32, #tpu.memory_space<vmem>>, vector<8x128xf32>
      tpu.vector_store %arg6[%c0_11, %c0_12], %12 {strides = array<i32>} : memref<8x128xf32, #tpu.memory_space<vmem>>, vector<8x128xf32>,
    } else {
    }
    %c0 = arith.constant 0 : index
    %c0_1 = arith.constant 0 : index
    %3 = vector.load %arg2[%c0, %c0_1] : memref<8x1024xf32, #tpu.memory_space<vmem>>, vector<8x1024xf32>
    %c0_2 = arith.constant 0 : index
    %c0_3 = arith.constant 0 : index
    %4 = vector.load %arg6[%c0_2, %c0_3] : memref<8x128xf32, #tpu.memory_space<vmem>>, vector<8x128xf32>
    %c0_4 = arith.constant 0 : index
    %c0_5 = arith.constant 0 : index
    %5 = vector.load %arg3[%c0_4, %c0_5] : memref<1024x128xf32, #tpu.memory_space<vmem>>, vector<1024x128xf32>
    %cst = arith.constant dense<0.000000e+00> : vector<8x128xf32>
    %6 = tpu.matmul %3, %5, %cst {dimension_numbers = #tpu.dot_dimension_numbers<[1], [0], [0], [1], [0, 0, 1, 1], [], []>} : vector<8x1024xf32>, vector<1024x128xf32>, vector<8x128xf32> -> vector<8x128xf32>
    %7 = arith.addf %4, %6 : vector<8x128xf32>
    %c0_6 = arith.constant 0 : index
    %c0_7 = arith.constant 0 : index
    %8 = vector.load %arg6[%c0_6, %c0_7] : memref<8x128xf32, #tpu.memory_space<vmem>>, vector<8x128xf32>
    tpu.vector_store %arg6[%c0_6, %c0_7], %7 {strides = array<i32>} : memref<8x128xf32, #tpu.memory_space<vmem>>, vector<8x128xf32>,
    %c0_i32_8 = arith.constant 0 : i32
    %9 = arith.cmpi eq, %arg1, %c0_i32_8 : i32
    %10 = arith.extui %9 : i1 to i32
    %c0_i32_9 = arith.constant 0 : i32
    %11 = arith.cmpi ne, %10, %c0_i32_9 : i32
    scf.if %11 {
      %c0_10 = arith.constant 0 : index
      %c0_11 = arith.constant 0 : index
      %12 = vector.load %arg6[%c0_10, %c0_11] : memref<8x128xf32, #tpu.memory_space<vmem>>, vector<8x128xf32>
      %c0_12 = arith.constant 0 : index
      %c0_13 = arith.constant 0 : index
      %13 = vector.load %arg4[%c0_12, %c0_13] : memref<1x128xf32, #tpu.memory_space<vmem>>, vector<1x128xf32>
      %14 = vector.broadcast %13 : vector<1x128xf32> to vector<8x128xf32>
      %15 = arith.addf %12, %14 : vector<8x128xf32>
      %c0_14 = arith.constant 0 : index
      %c0_15 = arith.constant 0 : index
      %16 = vector.load %arg5[%c0_14, %c0_15] : memref<8x128xf32, #tpu.memory_space<vmem>>, vector<8x128xf32>
      tpu.vector_store %arg5[%c0_14, %c0_15], %15 {strides = array<i32>} : memref<8x128xf32, #tpu.memory_space<vmem>>, vector<8x128xf32>,
    } else {
    }
    return
  }
  func.func @transform_0(%arg0: i32, %arg1: i32) -> (i32, i32) {
    %c0_i32 = arith.constant 0 : i32
    return %arg0, %arg1 : i32, i32
  }
  func.func @transform_1(%arg0: i32, %arg1: i32) -> (i32, i32) {
    %c0_i32 = arith.constant 0 : i32
    %c0_i32_0 = arith.constant 0 : i32
    return %arg1, %c0_i32 : i32, i32
  }
  func.func @transform_2(%arg0: i32, %arg1: i32) -> (i32, i32) {
    %c0_i32 = arith.constant 0 : i32
    %c0_i32_0 = arith.constant 0 : i32
    %c0_i32_1 = arith.constant 0 : i32
    return %c0_i32, %c0_i32_0 : i32, i32
  }
  func.func @transform_3(%arg0: i32, %arg1: i32) -> (i32, i32) {
    %c0_i32 = arith.constant 0 : i32
    %c0_i32_0 = arith.constant 0 : i32
    return %arg0, %c0_i32 : i32, i32
  }
}

</mosaic_0001>

<bundles_post_ra>
// kernel: classifier_forward.1
= control target key start
LH: loop header
LB: loop body
LE: loop exit
PB: predicated region body
PF: predicated region fallthrough
CT: control target
= control target key end

     0   :  { %s1030_s1 = inlined_call_operand.vmem [shape: f32[1024,128], index: 1, kind: input, shape index: {}]   ;;  %s1031_s0 = inlined_call_operand.vmem [shape: f32[8,1024], index: 0, kind: input, shape index: {}]   ;;  %s1032_s2 = inlined_call_operand.vmem [shape: f32[1,128], index: 2, kind: input, shape index: {}]   ;;  %s1033_s3 = inlined_call_operand.vmem [shape: f32[8,128], index: 3, kind: output, shape index: {}]  }
   0x1   :  { %v59_v0 = vld [vmem:[%s1030_s1 + $0xf8] sm:$0xff]  ;;  %v58_v4 = vld [vmem:[%s1030_s1 + $0xf0] sm:$0xff]  ;;  %v57_v8 = vld [vmem:[%s1030_s1 + $0xe8] sm:$0xff] }
   0x2   :  { %v91_v1 = vld [vmem:[%s1030_s1 + $0x1f8] sm:$0xff]  ;;  %456 = vmatprep.subr.mxu0 %v59_v0  ;;  %v90_v5 = vld [vmem:[%s1030_s1 + $0x1f0] sm:$0xff]  ;;  %v89_v9 = vld [vmem:[%s1030_s1 + $0x1e8] sm:$0xff] }
   0x3   :  { %v43_v2 = vld [vmem:[%s1030_s1 + $0x78] sm:$0xff]  ;;  %491 = vmatprep.subr.mxu1 %v91_v1  ;;  %v42_v6 = vld [vmem:[%s1030_s1 + $0x70] sm:$0xff]  ;;  %v41_v10 = vld [vmem:[%s1030_s1 + $0x68] sm:$0xff] }
   0x4   :  { %v75_v3 = vld [vmem:[%s1030_s1 + $0x178] sm:$0xff]  ;;  %457 = vmatpush3.msra.mxu0 %v43_v2  ;;  %v74_v7 = vld [vmem:[%s1030_s1 + $0x170] sm:$0xff]  ;;  %v73_v11 = vld [vmem:[%s1030_s1 + $0x168] sm:$0xff] }
   0x5   :  { %492 = vmatpush3.msra.mxu1 %v75_v3  ;;  %458 = vmatprep.subr.mxu0 %v58_v4  ;;  %v56_v12 = vld [vmem:[%s1030_s1 + $0xe0] sm:$0xff]  ;;  %v55_v16 = vld [vmem:[%s1030_s1 + $0xd8] sm:$0xff]  ;;  %v54_v20 = vld [vmem:[%s1030_s1 + $0xd0] sm:$0xff] }
   0x6   :  { %493 = vmatprep.subr.mxu1 %v90_v5  ;;  %459 = vmatpush3.msra.mxu0 %v42_v6  ;;  %v88_v13 = vld [vmem:[%s1030_s1 + $0x1e0] sm:$0xff]  ;;  %v87_v17 = vld [vmem:[%s1030_s1 + $0x1d8] sm:$0xff]  ;;  %v86_v21 = vld [vmem:[%s1030_s1 + $0x1d0] sm:$0xff] }
   0x7   :  { %494 = vmatpush3.msra.mxu1 %v74_v7  ;;  %460 = vmatprep.subr.mxu0 %v57_v8  ;;  %v40_v14 = vld [vmem:[%s1030_s1 + $0x60] sm:$0xff]  ;;  %v39_v18 = vld [vmem:[%s1030_s1 + $0x58] sm:$0xff]  ;;  %v38_v22 = vld [vmem:[%s1030_s1 + $0x50] sm:$0xff] }
   0x8   :  { %495 = vmatprep.subr.mxu1 %v89_v9  ;;  %v72_v15 = vld [vmem:[%s1030_s1 + $0x160] sm:$0xff]  ;;  %461 = vmatpush3.msra.mxu0 %v41_v10  ;;  %v71_v19 = vld [vmem:[%s1030_s1 + $0x158] sm:$0xff]  ;;  %v70_v23 = vld [vmem:[%s1030_s1 + $0x150] sm:$0xff] }
   0x9   :  { %496 = vmatpush3.msra.mxu1 %v73_v11  ;;  %462 = vmatprep.subr.mxu0 %v56_v12  ;;  %v53_v24 = vld [vmem:[%s1030_s1 + $0xc8] sm:$0xff]  ;;  %v52_v28 = vld [vmem:[%s1030_s1 + $0xc0] sm:$0xff]  ;;  %v51_v32 = vld [vmem:[%s1030_s1 + $0xb8] sm:$0xff] }
   0xa   :  { %497 = vmatprep.subr.mxu1 %v88_v13  ;;  %463 = vmatpush3.msra.mxu0 %v40_v14  ;;  %v85_v25 = vld [vmem:[%s1030_s1 + $0x1c8] sm:$0xff]  ;;  %v84_v29 = vld [vmem:[%s1030_s1 + $0x1c0] sm:$0xff]  ;;  %v83_v33 = vld [vmem:[%s1030_s1 + $0x1b8] sm:$0xff] }
   0xb   :  { %498 = vmatpush3.msra.mxu1 %v72_v15  ;;  %464 = vmatprep.subr.mxu0 %v55_v16  ;;  %v37_v26 = vld [vmem:[%s1030_s1 + $0x48] sm:$0xff]  ;;  %v36_v30 = vld [vmem:[%s1030_s1 + $0x40] sm:$0xff]  ;;  %v35_v34 = vld [vmem:[%s1030_s1 + $0x38] sm:$0xff] }
   0xc   :  { %499 = vmatprep.subr.mxu1 %v87_v17  ;;  %465 = vmatpush3.msra.mxu0 %v39_v18  ;;  %v69_v27 = vld [vmem:[%s1030_s1 + $0x148] sm:$0xff]  ;;  %v68_v31 = vld [vmem:[%s1030_s1 + $0x140] sm:$0xff]  ;;  %v67_v35 = vld [vmem:[%s1030_s1 + $0x138] sm:$0xff] }
   0xd   :  { %500 = vmatpush3.msra.mxu1 %v71_v19  ;;  %466 = vmatprep.subr.mxu0 %v54_v20  ;;  %v50_v36 = vld [vmem:[%s1030_s1 + $0xb0] sm:$0xff]  ;;  %v49_v40 = vld [vmem:[%s1030_s1 + $0xa8] sm:$0xff]  ;;  %v48_v44 = vld [vmem:[%s1030_s1 + $0xa0] sm:$0xff] }
   0xe   :  { %501 = vmatprep.subr.mxu1 %v86_v21  ;;  %467 = vmatpush3.msra.mxu0 %v38_v22  ;;  %v82_v37 = vld [vmem:[%s1030_s1 + $0x1b0] sm:$0xff]  ;;  %v81_v41 = vld [vmem:[%s1030_s1 + $0x1a8] sm:$0xff]  ;;  %v80_v45 = vld [vmem:[%s1030_s1 + $0x1a0] sm:$0xff] }
   0xf   :  { %502 = vmatpush3.msra.mxu1 %v70_v23  ;;  %468 = vmatprep.subr.mxu0 %v53_v24  ;;  %v34_v38 = vld [vmem:[%s1030_s1 + $0x30] sm:$0xff]  ;;  %v33_v42 = vld [vmem:[%s1030_s1 + $0x28] sm:$0xff]  ;;  %v32_v46 = vld [vmem:[%s1030_s1 + $0x20] sm:$0xff] }
  0x10   :  { %503 = vmatprep.subr.mxu1 %v85_v25  ;;  %469 = vmatpush3.msra.mxu0 %v37_v26  ;;  %v66_v39 = vld [vmem:[%s1030_s1 + $0x130] sm:$0xff]  ;;  %v65_v43 = vld [vmem:[%s1030_s1 + $0x128] sm:$0xff]  ;;  %v64_v47 = vld [vmem:[%s1030_s1 + $0x120] sm:$0xff] }
  0x11   :  { %504 = vmatpush3.msra.mxu1 %v69_v27  ;;  %470 = vmatprep.subr.mxu0 %v52_v28  ;;  %v47_v48 = vld [vmem:[%s1030_s1 + $0x98] sm:$0xff]  ;;  %v46_v52 = vld [vmem:[%s1030_s1 + $0x90] sm:$0xff]  ;;  %v45_v56 = vld [vmem:[%s1030_s1 + $0x88] sm:$0xff] }
  0x12   :  { %505 = vmatprep.subr.mxu1 %v84_v29  ;;  %471 = vmatpush3.msra.mxu0 %v36_v30  ;;  %v79_v49 = vld [vmem:[%s1030_s1 + $0x198] sm:$0xff]  ;;  %v78_v53 = vld [vmem:[%s1030_s1 + $0x190] sm:$0xff]  ;;  %v77_v57 = vld [vmem:[%s1030_s1 + $0x188] sm:$0xff] }
  0x13   :  { %506 = vmatpush3.msra.mxu1 %v68_v31  ;;  %472 = vmatprep.subr.mxu0 %v51_v32  ;;  %v31_v50 = vld [vmem:[%s1030_s1 + $0x18] sm:$0xff]  ;;  %v30_v54 = vld [vmem:[%s1030_s1 + $0x10] sm:$0xff]  ;;  %v29_v58 = vld [vmem:[%s1030_s1 + $0x8] sm:$0xff] }
  0x14   :  { %507 = vmatprep.subr.mxu1 %v83_v33  ;;  %473 = vmatpush3.msra.mxu0 %v35_v34  ;;  %v63_v51 = vld [vmem:[%s1030_s1 + $0x118] sm:$0xff]  ;;  %v62_v55 = vld [vmem:[%s1030_s1 + $0x110] sm:$0xff]  ;;  %v61_v59 = vld [vmem:[%s1030_s1 + $0x108] sm:$0xff] }
  0x15   :  { %508 = vmatpush3.msra.mxu1 %v67_v35  ;;  %474 = vmatprep.subr.mxu0 %v50_v36  ;;  %v44_v60 = vld [vmem:[%s1030_s1 + $0x80] sm:$0xff]  ;;  %v20_v63 = vld [vmem:[%s1031_s0 + $0x8] sm:$0xff]  ;;  %v22_v1 = vld [vmem:[%s1031_s0 + $0x18] sm:$0xff] }
  0x16   :  { %509 = vmatprep.subr.mxu1 %v82_v37  ;;  %475 = vmatpush3.msra.mxu0 %v34_v38  ;;  %v76_v61 = vld [vmem:[%s1030_s1 + $0x180] sm:$0xff]  ;;  %v21_v3 = vld [vmem:[%s1031_s0 + $0x10] sm:$0xff]  ;;  %v123_v4 = vld [vmem:[%s1030_s1 + $0x2f8] sm:$0xff] }
  0x17   :  { %510 = vmatpush3.msra.mxu1 %v66_v39  ;;  %476 = vmatprep.subr.mxu0 %v49_v40  ;;  %v28_v62 = vld [vmem:[%s1030_s1] sm:$0xff]  ;;  %v155_v5 = vld [vmem:[%s1030_s1 + $0x3f8] sm:$0xff]  ;;  %v122_v8 = vld [vmem:[%s1030_s1 + $0x2f0] sm:$0xff] }
  0x18   :  { %511 = vmatprep.subr.mxu1 %v81_v41  ;;  %477 = vmatpush3.msra.mxu0 %v33_v42  ;;  %v60_v0 = vld [vmem:[%s1030_s1 + $0x100] sm:$0xff]  ;;  %v107_v6 = vld [vmem:[%s1030_s1 + $0x278] sm:$0xff]  ;;  %v154_v9 = vld [vmem:[%s1030_s1 + $0x3f0] sm:$0xff] }
  0x19   :  { %512 = vmatpush3.msra.mxu1 %v65_v43  ;;  %478 = vmatprep.subr.mxu0 %v48_v44  ;;  %v19_v2 = vld [vmem:[%s1031_s0] sm:$0xff]  ;;  %v139_v7 = vld [vmem:[%s1030_s1 + $0x378] sm:$0xff]  ;;  %v106_v10 = vld [vmem:[%s1030_s1 + $0x270] sm:$0xff] }
  0x1a   :  { %513 = vmatprep.subr.mxu1 %v80_v45  ;;  %479 = vmatpush3.msra.mxu0 %v32_v46  ;;  %v138_v11 = vld [vmem:[%s1030_s1 + $0x370] sm:$0xff]  ;;  %v121_v12 = vld [vmem:[%s1030_s1 + $0x2e8] sm:$0xff]  ;;  %v120_v16 = vld [vmem:[%s1030_s1 + $0x2e0] sm:$0xff] }
  0x1b   :  { %514 = vmatpush3.msra.mxu1 %v64_v47  ;;  %480 = vmatprep.subr.mxu0 %v47_v48  ;;  %v153_v13 = vld [vmem:[%s1030_s1 + $0x3e8] sm:$0xff]  ;;  %v152_v17 = vld [vmem:[%s1030_s1 + $0x3e0] sm:$0xff]  ;;  %v119_v20 = vld [vmem:[%s1030_s1 + $0x2d8] sm:$0xff] }
  0x1c   :  { %515 = vmatprep.subr.mxu1 %v79_v49  ;;  %481 = vmatpush3.msra.mxu0 %v31_v50  ;;  %v105_v14 = vld [vmem:[%s1030_s1 + $0x268] sm:$0xff]  ;;  %v104_v18 = vld [vmem:[%s1030_s1 + $0x260] sm:$0xff]  ;;  %v151_v21 = vld [vmem:[%s1030_s1 + $0x3d8] sm:$0xff] }
  0x1d   :  { %516 = vmatpush3.msra.mxu1 %v63_v51  ;;  %482 = vmatprep.subr.mxu0 %v46_v52  ;;  %v137_v15 = vld [vmem:[%s1030_s1 + $0x368] sm:$0xff]  ;;  %v136_v19 = vld [vmem:[%s1030_s1 + $0x360] sm:$0xff]  ;;  %v103_v22 = vld [vmem:[%s1030_s1 + $0x258] sm:$0xff] }
  0x1e   :  { %517 = vmatprep.subr.mxu1 %v78_v53  ;;  %483 = vmatpush3.msra.mxu0 %v30_v54  ;;  %v135_v23 = vld [vmem:[%s1030_s1 + $0x358] sm:$0xff]  ;;  %v118_v24 = vld [vmem:[%s1030_s1 + $0x2d0] sm:$0xff]  ;;  %v117_v28 = vld [vmem:[%s1030_s1 + $0x2c8] sm:$0xff] }
  0x1f   :  { %518 = vmatpush3.msra.mxu1 %v62_v55  ;;  %484 = vmatprep.subr.mxu0 %v45_v56  ;;  %v150_v25 = vld [vmem:[%s1030_s1 + $0x3d0] sm:$0xff]  ;;  %v149_v29 = vld [vmem:[%s1030_s1 + $0x3c8] sm:$0xff]  ;;  %v116_v32 = vld [vmem:[%s1030_s1 + $0x2c0] sm:$0xff] }
  0x20   :  { %519 = vmatprep.subr.mxu1 %v77_v57  ;;  %485 = vmatpush3.msra.mxu0 %v29_v58  ;;  %v102_v26 = vld [vmem:[%s1030_s1 + $0x250] sm:$0xff]  ;;  %v101_v30 = vld [vmem:[%s1030_s1 + $0x248] sm:$0xff]  ;;  %v148_v33 = vld [vmem:[%s1030_s1 + $0x3c0] sm:$0xff] }
  0x21   :  { %520 = vmatpush3.msra.mxu1 %v61_v59  ;;  %486 = vmatprep.subr.mxu0 %v44_v60  ;;  %v134_v27 = vld [vmem:[%s1030_s1 + $0x350] sm:$0xff]  ;;  %v133_v31 = vld [vmem:[%s1030_s1 + $0x348] sm:$0xff]  ;;  %v100_v34 = vld [vmem:[%s1030_s1 + $0x240] sm:$0xff] }
  0x22   :  { %521 = vmatprep.subr.mxu1 %v76_v61  ;;  %487 = vmatpush3.msra.mxu0 %v28_v62  ;;  %v132_v35 = vld [vmem:[%s1030_s1 + $0x340] sm:$0xff]  ;;  %v115_v36 = vld [vmem:[%s1030_s1 + $0x2b8] sm:$0xff]  ;;  %v114_v40 = vld [vmem:[%s1030_s1 + $0x2b0] sm:$0xff] }
  0x23   :  { %220 = vmatprep.mubr.f32.mxu0 %v20_v63  ;;  %522 = vmatpush3.msra.mxu1 %v60_v0  ;;  %v147_v37 = vld [vmem:[%s1030_s1 + $0x3b8] sm:$0xff]  ;;  %v146_v41 = vld [vmem:[%s1030_s1 + $0x3b0] sm:$0xff]  ;;  %v113_v44 = vld [vmem:[%s1030_s1 + $0x2a8] sm:$0xff] }
  0x24   :  { %290 = vmatprep.mubr.f32.mxu1 %v22_v1  ;;  %221 = vmatmul.mubr.f32.vlgmr.msra.gmra.mxu0 %v19_v2  ;;  %v99_v38 = vld [vmem:[%s1030_s1 + $0x238] sm:$0xff]  ;;  %v98_v42 = vld [vmem:[%s1030_s1 + $0x230] sm:$0xff]  ;;  %v145_v45 = vld [vmem:[%s1030_s1 + $0x3a8] sm:$0xff] }
  0x25   :  { %291 = vmatmul.mubr.f32.vlgmr.msra.gmra.mxu1 %v21_v3  ;;  %526 = vmatprep.subr.mxu0 %v123_v4  ;;  %v131_v39 = vld [vmem:[%s1030_s1 + $0x338] sm:$0xff]  ;;  %v130_v43 = vld [vmem:[%s1030_s1 + $0x330] sm:$0xff]  ;;  %v97_v46 = vld [vmem:[%s1030_s1 + $0x228] sm:$0xff] }
  0x26   :  { %561 = vmatprep.subr.mxu1 %v155_v5  ;;  %527 = vmatpush3.msra.mxu0 %v107_v6  ;;  %v129_v47 = vld [vmem:[%s1030_s1 + $0x328] sm:$0xff]  ;;  %v112_v48 = vld [vmem:[%s1030_s1 + $0x2a0] sm:$0xff]  ;;  %v111_v52 = vld [vmem:[%s1030_s1 + $0x298] sm:$0xff] }
  0x27   :  { %562 = vmatpush3.msra.mxu1 %v139_v7  ;;  %528 = vmatprep.subr.mxu0 %v122_v8  ;;  %v144_v49 = vld [vmem:[%s1030_s1 + $0x3a0] sm:$0xff]  ;;  %v143_v53 = vld [vmem:[%s1030_s1 + $0x398] sm:$0xff]  ;;  %v110_v56 = vld [vmem:[%s1030_s1 + $0x290] sm:$0xff] }
  0x28   :  { %563 = vmatprep.subr.mxu1 %v154_v9  ;;  %529 = vmatpush3.msra.mxu0 %v106_v10  ;;  %v96_v50 = vld [vmem:[%s1030_s1 + $0x220] sm:$0xff]  ;;  %v95_v54 = vld [vmem:[%s1030_s1 + $0x218] sm:$0xff]  ;;  %v142_v57 = vld [vmem:[%s1030_s1 + $0x390] sm:$0xff] }
  0x29   :  { %564 = vmatpush3.msra.mxu1 %v138_v11  ;;  %530 = vmatprep.subr.mxu0 %v121_v12  ;;  %v128_v51 = vld [vmem:[%s1030_s1 + $0x320] sm:$0xff]  ;;  %v127_v55 = vld [vmem:[%s1030_s1 + $0x318] sm:$0xff]  ;;  %v94_v58 = vld [vmem:[%s1030_s1 + $0x210] sm:$0xff] }
  0x2a   :  { %565 = vmatprep.subr.mxu1 %v153_v13  ;;  %531 = vmatpush3.msra.mxu0 %v105_v14  ;;  %v126_v59 = vld [vmem:[%s1030_s1 + $0x310] sm:$0xff]  ;;  %v109_v60 = vld [vmem:[%s1030_s1 + $0x288] sm:$0xff]  ;;  %v108_v0 = vld [vmem:[%s1030_s1 + $0x280] sm:$0xff] }
  0x2b   :  { %566 = vmatpush3.msra.mxu1 %v137_v15  ;;  %532 = vmatprep.subr.mxu0 %v120_v16  ;;  %v141_v61 = vld [vmem:[%s1030_s1 + $0x388] sm:$0xff]  ;;  %v140_v1 = vld [vmem:[%s1030_s1 + $0x380] sm:$0xff]  ;;  %v26_v5 = vld [vmem:[%s1031_s0 + $0x38] sm:$0xff] }
  0x2c   :  { %567 = vmatprep.subr.mxu1 %v152_v17  ;;  %533 = vmatpush3.msra.mxu0 %v104_v18  ;;  %v93_v62 = vld [vmem:[%s1030_s1 + $0x208] sm:$0xff]  ;;  %v92_v2 = vld [vmem:[%s1030_s1 + $0x200] sm:$0xff]  ;;  %v25_v7 = vld [vmem:[%s1031_s0 + $0x30] sm:$0xff] }
  0x2d   :  { %568 = vmatpush3.msra.mxu1 %v136_v19  ;;  %534 = vmatprep.subr.mxu0 %v119_v20  ;;  %v125_v63 = vld [vmem:[%s1030_s1 + $0x308] sm:$0xff]  ;;  %v124_v4 = vld [vmem:[%s1030_s1 + $0x300] sm:$0xff] }
  0x2e   :  { %569 = vmatprep.subr.mxu1 %v151_v21  ;;  %535 = vmatpush3.msra.mxu0 %v103_v22  ;;  %v24_v3 = vld [vmem:[%s1031_s0 + $0x28] sm:$0xff]  ;;  %v23_v6 = vld [vmem:[%s1031_s0 + $0x20] sm:$0xff] }
  0x2f   :  { %570 = vmatpush3.msra.mxu1 %v135_v23  ;;  %536 = vmatprep.subr.mxu0 %v118_v24  ;;  %v455_v22 = vld [vmem:[%s1032_s2] ss:$0 sm:$0xff] }
  0x30   :  { %571 = vmatprep.subr.mxu1 %v150_v25  ;;  %537 = vmatpush3.msra.mxu0 %v102_v26 }
  0x31   :  { %572 = vmatpush3.msra.mxu1 %v134_v27  ;;  %538 = vmatprep.subr.mxu0 %v117_v28 }
  0x32   :  { %573 = vmatprep.subr.mxu1 %v149_v29  ;;  %539 = vmatpush3.msra.mxu0 %v101_v30 }
  0x33   :  { %574 = vmatpush3.msra.mxu1 %v133_v31  ;;  %540 = vmatprep.subr.mxu0 %v116_v32 }
  0x34   :  { %575 = vmatprep.subr.mxu1 %v148_v33  ;;  %541 = vmatpush3.msra.mxu0 %v100_v34 }
  0x35   :  { %576 = vmatpush3.msra.mxu1 %v132_v35  ;;  %542 = vmatprep.subr.mxu0 %v115_v36 }
  0x36   :  { %577 = vmatprep.subr.mxu1 %v147_v37  ;;  %543 = vmatpush3.msra.mxu0 %v99_v38 }
  0x37   :  { %578 = vmatpush3.msra.mxu1 %v131_v39  ;;  %544 = vmatprep.subr.mxu0 %v114_v40 }
  0x38   :  { %579 = vmatprep.subr.mxu1 %v146_v41  ;;  %545 = vmatpush3.msra.mxu0 %v98_v42 }
  0x39   :  { %580 = vmatpush3.msra.mxu1 %v130_v43  ;;  %546 = vmatprep.subr.mxu0 %v113_v44 }
  0x3a   :  { %581 = vmatprep.subr.mxu1 %v145_v45  ;;  %547 = vmatpush3.msra.mxu0 %v97_v46 }
  0x3b   :  { %582 = vmatpush3.msra.mxu1 %v129_v47  ;;  %548 = vmatprep.subr.mxu0 %v112_v48 }
  0x3c   :  { %583 = vmatprep.subr.mxu1 %v144_v49  ;;  %549 = vmatpush3.msra.mxu0 %v96_v50 }
  0x3d   :  { %584 = vmatpush3.msra.mxu1 %v128_v51  ;;  %550 = vmatprep.subr.mxu0 %v111_v52 }
  0x3e   :  { %585 = vmatprep.subr.mxu1 %v143_v53  ;;  %551 = vmatpush3.msra.mxu0 %v95_v54 }
  0x3f   :  { %586 = vmatpush3.msra.mxu1 %v127_v55  ;;  %552 = vmatprep.subr.mxu0 %v110_v56 }
  0x40   :  { %587 = vmatprep.subr.mxu1 %v142_v57  ;;  %553 = vmatpush3.msra.mxu0 %v94_v58 }
  0x41   :  { %588 = vmatpush3.msra.mxu1 %v126_v59  ;;  %554 = vmatprep.subr.mxu0 %v109_v60 }
  0x42   :  { %589 = vmatprep.subr.mxu1 %v141_v61  ;;  %555 = vmatpush3.msra.mxu0 %v93_v62 }
  0x43   :  { %590 = vmatpush3.msra.mxu1 %v125_v63  ;;  %556 = vmatprep.subr.mxu0 %v108_v0 }
  0x44   :  { %591 = vmatprep.subr.mxu1 %v140_v1  ;;  %557 = vmatpush3.msra.mxu0 %v92_v2 }
  0x45   :  { %360 = vmatprep.mubr.f32.mxu0 %v24_v3  ;;  %592 = vmatpush3.msra.mxu1 %v124_v4 }
  0x46   :  { %430 = vmatprep.mubr.f32.mxu1 %v26_v5  ;;  %361 = vmatmul.mubr.f32.vlgmr.msra.gmra.mxu0 %v23_v6 }
  0x47   :  { %431 = vmatmul.mubr.f32.vlgmr.msra.gmra.mxu1 %v25_v7 }
  0xe4   :  { %v488_v8 = vpop.f32.mrf.mxu0 }
  0xe5   :  { %v523_v9 = vpop.f32.mrf.mxu1 }
  0xe6   :  { %v489_v10 = vpop.f32.mrf.mxu0 }
  0xe7   :  { %v524_v11 = vpop.f32.mrf.mxu1  ;;  %v490_v12 = vadd.f32 %v489_v10, %v488_v8 }
  0xe8   :  { %v525_v13 = vadd.f32 %v524_v11, %v523_v9 }
  0xea   :  { %v293_v18 = vadd.f32 %v525_v13, %v490_v12 }
 0x106   :  { %v558_v14 = vpop.f32.mrf.mxu0 }
 0x107   :  { %v593_v15 = vpop.f32.mrf.mxu1 }
 0x108   :  { %v559_v16 = vpop.f32.mrf.mxu0 }
 0x109   :  { %v594_v17 = vpop.f32.mrf.mxu1  ;;  %v560_v19 = vadd.f32 %v559_v16, %v558_v14 }
 0x10a   :  { %v595_v21 = vadd.f32 %v594_v17, %v593_v15 }
 0x10b   :  { %v363_v20 = vadd.f32 %v560_v19, %v293_v18 }
 0x10d   :  { %v433_v23 = vadd.f32 %v595_v21, %v363_v20 }
 0x10f   :  { %v449_v24 = vadd.f32 %v455_v22, %v433_v23 }
 0x111   :  { %450 = vst [vmem:[%s1033_s3] sm:$0xff] %v449_v24 }

</bundles_post_ra>
